<compile_context>
chip_gen: v5e
topology: v5e:2x2
jax: 0.10.0
libtpu: 0.0.40
codegen_flags: <defaults>
</compile_context>

<pallas_src>
import functools
import math

import jax
import jax.numpy as jnp
from jax.experimental import pallas as pl
from jax.experimental.pallas import tpu as pltpu


def _cdiv(a, b):
    return -(-a // b)


def _minmax_scaler_kernel(x_ref, o_ref, *, eps):
    # x_ref / o_ref: (B, C_blk, T, F_blk). Reduce over axes (0, 2) = (B, T);
    # both are non-lane axes, so the reduce is cheap VPU/sublane work.
    x = x_ref[...]

    # Sequential single-axis reduces (robust lowering; identical result to a
    # fused multi-axis reduce for min/max).
    mn = jnp.min(jnp.min(x, axis=0, keepdims=True), axis=2, keepdims=True)
    mx = jnp.max(jnp.max(x, axis=0, keepdims=True), axis=2, keepdims=True)

    # Hoisted per-(c, f) statistics in f32 (eps=1e-8 would underflow in bf16).
    mn32 = mn.astype(jnp.float32)
    mx32 = mx.astype(jnp.float32)
    scale = pl.reciprocal(mx32 - mn32 + eps, approx=False)   # 1 EUP op / column
    offset = -mn32 * scale

    if o_ref.dtype == jnp.float32:
        y = x * scale + offset
    else:
        # Low-precision input: do the elementwise pass in the input dtype
        # (halves vreg / VALU pressure); scale/offset were computed in f32.
        y = x * scale.astype(x.dtype) + offset.astype(x.dtype)
    # Single store of the output (keeps the one vst slot on v5e unpressured).
    o_ref[...] = y.astype(o_ref.dtype)


def _block_budget_bytes():
    """Per-block byte budget.

    Bigger blocks amortize the ~0.35 us per-grid-step overhead.  Capped so
    that 2x input + 2x output double buffers plus f32 temps stay well inside
    scoped VMEM on every generation (v7x has only 64 MiB physical VMEM vs
    128 MiB on v5e/v6e).
    """
    try:
        info = pltpu.get_tpu_info()
        vmem = int(getattr(info, "vmem_capacity_bytes", 64 << 20))
    except Exception:
        vmem = 64 << 20
    return int(min(6 << 20, max(2 << 20, vmem // 16)))


def _pick_tiles(B, C, T, F, itemsize, budget_bytes):
    """Pick (c_blk, f_blk) for blocks of shape (B, c_blk, T, f_blk)."""
    # Prefer keeping F whole: each (b, c, t) row is then one contiguous
    # F*itemsize run in HBM -> few long DMA descriptors + unmasked wide vst.
    per_channel = B * T * F * itemsize
    if per_channel <= budget_bytes or F <= 128 or F % 128 != 0:
        f_blk = F
    else:
        # A single channel alone is over budget: split F lane-densely.
        f_blk = (budget_bytes // (B * T * itemsize)) // 128 * 128
        f_blk = int(min(max(f_blk, 128), F))

    per_channel_blk = B * T * f_blk * itemsize
    c_blk = int(max(1, min(C, budget_bytes // max(per_channel_blk, 1))))
    # TODO(synk): if B*T*f_blk*itemsize alone exceeds scoped VMEM, switch to a
    # two-phase scheme (pass 1: running min/max into a small scratch over
    # T-chunks with a trailing "arbitrary" grid axis; pass 2: normalize).

    # Guarantee >= ~4 grid steps when possible so the software pipeline can
    # overlap DMA/compute and both v7x TensorCores get work.  Only kicks in
    # for small tensors, where the extra per-step overhead is negligible.
    nf = _cdiv(F, f_blk)
    if nf * _cdiv(C, c_blk) < 4:
        want_c_blocks = min(C, _cdiv(4, nf))
        c_blk = max(1, _cdiv(C, want_c_blocks))

    return c_blk, f_blk


def scaler_instance_minmax(x, *, dims=(0, 2), eps=1e-8):
    """Equivalent of Scaler(statistic='instance', normtype='minmax', dims=(0,2)).

    x: (B, C, T, F).  min/max over axes (0, 2) with keepdims, then
    (x - min) / (max - min + eps), broadcast over the full shape.
    """
    assert x.ndim == 4 and tuple(dims) == (0, 2), (
        "kernel specialized for 4-D input with dims=(0, 2)")
    B, C, T, F = x.shape

    budget = _block_budget_bytes()
    c_blk, f_blk = _pick_tiles(B, C, T, F, x.dtype.itemsize, budget)

    grid = (_cdiv(C, c_blk), _cdiv(F, f_blk))       # ragged C/F blocks are OK:
    block = (B, c_blk, T, f_blk)                     # stats are per-(c, f) column
    index_map = lambda ci, fi: (0, ci, 0, fi)

    return pl.pallas_call(
        functools.partial(_minmax_scaler_kernel, eps=eps),
        out_shape=jax.ShapeDtypeStruct(x.shape, x.dtype),
        grid=grid,
        in_specs=[pl.BlockSpec(block, index_map)],
        out_specs=pl.BlockSpec(block, index_map),
        compiler_params=pltpu.CompilerParams(
            dimension_semantics=("parallel", "parallel"),
            vmem_limit_bytes=48 << 20),
    )(x)


def _reference(x, *, dims=(0, 2), eps=1e-8):
    x = x.astype(jnp.float32)
    mn = jnp.min(x, axis=dims, keepdims=True)
    mx = jnp.max(x, axis=dims, keepdims=True)
    return (x - mn) / (mx - mn + eps)


if __name__ == "__main__":
    key = jax.random.PRNGKey(0)

    # Case 1: base shape (multi-step grid, whole-F blocks), f32.
    x1 = jax.random.normal(key, (2, 4, 16, 16), dtype=jnp.float32)
    o1 = jax.block_until_ready(scaler_instance_minmax(x1))
    assert o1.shape == x1.shape and o1.dtype == x1.dtype
    assert jnp.allclose(o1, _reference(x1), atol=1e-5, rtol=1e-5)

    # Case 2: ragged C (prime) and F < 128 (masked-store path), f32.
    k2 = jax.random.PRNGKey(1)
    x2 = jax.random.normal(k2, (2, 5, 16, 20), dtype=jnp.float32)
    o2 = jax.block_until_ready(scaler_instance_minmax(x2))
    assert o2.shape == x2.shape and o2.dtype == x2.dtype
    assert jnp.allclose(o2, _reference(x2), atol=1e-5, rtol=1e-5)

    # Case 3: bf16 input (low-precision elementwise path).
    k3 = jax.random.PRNGKey(2)
    x3 = jax.random.normal(k3, (2, 4, 16, 16), dtype=jnp.bfloat16)
    o3 = jax.block_until_ready(scaler_instance_minmax(x3))
    assert o3.shape == x3.shape and o3.dtype == x3.dtype
    assert jnp.allclose(o3.astype(jnp.float32), _reference(x3),
                        atol=3e-2, rtol=3e-2)

    print("KERNEL_OK")
</pallas_src>

<mosaic_0001>
module attributes {stable_mosaic.version = 11 : i64} {
  func.func @_minmax_scaler_kernel(%arg0: i32, %arg1: i32, %arg2: memref<2x1x16x16xf32, #tpu.memory_space<vmem>>, %arg3: memref<2x1x16x16xf32, #tpu.memory_space<vmem>>) attributes {dimension_semantics = [#tpu.dimension_semantics<parallel>, #tpu.dimension_semantics<parallel>], iteration_bounds = array<i64: 4, 1>, scalar_prefetch = 0 : i64, scratch_operands = 0 : i64, tpu.core_type = #tpu.core_type<tc>, window_params = [{transform_indices = @transform_0, window_bounds = array<i64: 2, 1, 16, 16>}, {transform_indices = @transform_1, window_bounds = array<i64: 2, 1, 16, 16>}]} {
    %c0 = arith.constant 0 : index
    %c0_0 = arith.constant 0 : index
    %c0_1 = arith.constant 0 : index
    %c0_2 = arith.constant 0 : index
    %0 = vector.load %arg2[%c0, %c0_0, %c0_1, %c0_2] : memref<2x1x16x16xf32, #tpu.memory_space<vmem>>, vector<2x1x16x16xf32>
    %cst = arith.constant dense<0x7F800000> : vector<1x16x16xf32>
    %1 = vector.multi_reduction <minimumf>, %0, %cst [0] : vector<2x1x16x16xf32> to vector<1x16x16xf32>
    %2 = vector.shape_cast %1 : vector<1x16x16xf32> to vector<1x1x16x16xf32>
    %cst_3 = arith.constant dense<0x7F800000> : vector<1x1x16xf32>
    %3 = vector.multi_reduction <minimumf>, %2, %cst_3 [2] : vector<1x1x16x16xf32> to vector<1x1x16xf32>
    %4 = vector.shape_cast %3 : vector<1x1x16xf32> to vector<1x1x1x16xf32>
    %cst_4 = arith.constant dense<0xFF800000> : vector<1x16x16xf32>
    %5 = vector.multi_reduction <maximumf>, %0, %cst_4 [0] : vector<2x1x16x16xf32> to vector<1x16x16xf32>
    %6 = vector.shape_cast %5 : vector<1x16x16xf32> to vector<1x1x16x16xf32>
    %cst_5 = arith.constant dense<0xFF800000> : vector<1x1x16xf32>
    %7 = vector.multi_reduction <maximumf>, %6, %cst_5 [2] : vector<1x1x16x16xf32> to vector<1x1x16xf32>
    %8 = vector.shape_cast %7 : vector<1x1x16xf32> to vector<1x1x1x16xf32>
    %9 = arith.subf %8, %4 : vector<1x1x1x16xf32>
    %cst_6 = arith.constant 9.99999993E-9 : f32
    %10 = vector.broadcast %cst_6 : f32 to vector<1x1x1x16xf32>
    %11 = arith.addf %9, %10 : vector<1x1x1x16xf32>
    %12 = tpu.reciprocal %11 : vector<1x1x1x16xf32> -> vector<1x1x1x16xf32>
    %cst_7 = arith.constant 0.000000e+00 : f32
    %13 = vector.broadcast %cst_7 : f32 to vector<1x1x1x16xf32>
    %14 = arith.subf %13, %4 : vector<1x1x1x16xf32>
    %15 = arith.mulf %14, %12 : vector<1x1x1x16xf32>
    %16 = vector.broadcast %12 : vector<1x1x1x16xf32> to vector<2x1x16x16xf32>
    %17 = arith.mulf %0, %16 : vector<2x1x16x16xf32>
    %18 = vector.broadcast %15 : vector<1x1x1x16xf32> to vector<2x1x16x16xf32>
    %19 = arith.addf %17, %18 : vector<2x1x16x16xf32>
    %c0_8 = arith.constant 0 : index
    %c0_9 = arith.constant 0 : index
    %c0_10 = arith.constant 0 : index
    %c0_11 = arith.constant 0 : index
    %20 = vector.load %arg3[%c0_8, %c0_9, %c0_10, %c0_11] : memref<2x1x16x16xf32, #tpu.memory_space<vmem>>, vector<2x1x16x16xf32>
    tpu.vector_store %arg3[%c0_8, %c0_9, %c0_10, %c0_11], %19 {strides = array<i32>} : memref<2x1x16x16xf32, #tpu.memory_space<vmem>>, vector<2x1x16x16xf32>,
    return
  }
  func.func @transform_0(%arg0: i32, %arg1: i32) -> (i32, i32, i32, i32) {
    %c0_i32 = arith.constant 0 : i32
    %c0_i32_0 = arith.constant 0 : i32
    %c0_i32_1 = arith.constant 0 : i32
    return %c0_i32, %arg0, %c0_i32_0, %arg1 : i32, i32, i32, i32
  }
  func.func @transform_1(%arg0: i32, %arg1: i32) -> (i32, i32, i32, i32) {
    %c0_i32 = arith.constant 0 : i32
    %c0_i32_0 = arith.constant 0 : i32
    %c0_i32_1 = arith.constant 0 : i32
    return %c0_i32, %arg0, %c0_i32_0, %arg1 : i32, i32, i32, i32
  }
}

</mosaic_0001>

<bundles_post_ra>
// kernel: tpu_custom_call.1
= control target key start
LH: loop header
LB: loop body
LE: loop exit
PB: predicated region body
PF: predicated region fallthrough
CT: control target
= control target key end

     0   :  { %6 = vsyncpa [#allocation3], 0  ;;  %s708_s0 = inlined_call_operand.hbm [shape: f32[2,4,16,16], index: 0, kind: input, shape index: {}]   ;;  %s709_s1 = inlined_call_operand.hbm [shape: f32[2,4,16,16], index: 1, kind: output, shape index: {}]  }
   0x1   :  { %8 = vsyncpa [#allocation3 + $0x1], 0 }
   0x2   :  { %9 = vsyncpa [#allocation4], 0 }
   0x3   :  { %11 = vsyncpa [#allocation4 + $0x1], 0  ;;  %s552_s6 = smov 0   ;;  %s554_s7 = smov 0  }
   0x4   :  { %s556_s8 = smov 0   ;;  %s558_s9 = smov 0  }
   0x5   :  { %s560_s10 = smov 0   ;;  %s562_s11 = smov 0  }
   0x6 LB: > { %s369_s12 = sadd.s32 4294967295, %s527_s11   ;;  %s370_s13 = sadd.s32 4294967294, %s527_s11   ;;  %s527_s11 = sphi %s562_s11, %s17_s11   ;;  %s523_s10 = sphi %s560_s10, %s718_s10   ;;  %s519_s9 = sphi %s558_s9, %s717_s9   ;;  %s515_s8 = sphi %s556_s8, %s716_s8   ;;  %s511_s7 = sphi %s554_s7, %s715_s7   ;;  %s507_s6 = sphi %s552_s6, %s714_s6  }
   0x7   : > { %s29_s14 = sadd.s32 1, %s523_s10  ;;  %s38_s15 = sadd.s32 1, %s515_s8 }
   0x8   : > { %p31_p0 = scmp.ge.s32.totalorder %s29_s14, 4  ;;  %p45_p1 = scmp.ne.s32.totalorder %s515_s8, %s511_s7 }
   0x9   : > { %p46_p2 = scmp.eq.s32.totalorder %s527_s11, 0  ;;  %p51_p3 = scmp.ne.s32.totalorder %s511_s7, %s507_s6 }
   0xa   : > { %s720_s14 = smov (%p31_p0, %s29_s14), 0  ;;  %p52_p5 = scmp.eq.s32.totalorder %s369_s12, 0 }
   0xb   : > { %p593_p4 = por %p46_p2, %p45_p1  ;;  %s33_s17 = ssub.s32 %s523_s10, %s720_s14 }
   0xc   : > { %p77_p6 = scmp.eq.s32.totalorder %s369_s12, 3  ;;  %p36_p7 = scmp.eq.s32.totalorder %s33_s17, 0 }
   0xd   : > { %p599_p8 = por %p52_p5, %p51_p3  ;;  %p83_p10 = scmp.eq.s32.totalorder %s370_s13, 3 }
   0xe   : > { %p603_p9 = por %p77_p6, %p45_p1  ;;  %p372_p12 = scmp.ge.s32.totalorder %s527_s11, 4 }
   0xf   : > { %s608_s20 = scalar_select %p36_p7, %s515_s8, %s38_s15  }
  0x10   : > { %p610_p11 = por %p83_p10, %p51_p3  ;;  %99 = sbr.rel (%p372_p12) target bundleno = 35 (0x23), region = 16 }
  0x15   : > { %s103_s22 = sand.u32 1, %s515_s8   ;;  %s386_s23 = sshll.u32 %s523_s10, 4 }
  0x16   : > { %s373_s24 = sshll.u32 %s103_s22, 5  ;;  %s113_s27 = scalar_lea.hbm %s708_s0, %s386_s23 }
  0x17   : > { %s388_s28 = scalar_select %p593_p4, [#allocation0], [#allocation10] }
  0x18   : > { %s126_s29 = sshll.u32 %s113_s27, 4  ;;  %s107_s30 = scalar_lea.vmem [#allocation2], %s373_s24  ;;  %s127_s29 = int_to_ptr.hbm [resolvable:$true] %s126_s29 }
  0x19   : > { %s128_s2 = sshll.u32 %s107_s30, 4  ;;  %s118_s3 = sld [smem:[%s388_s28]]   ;;  %s129_s2 = int_to_ptr.vmem [resolvable:$true] %s128_s2 }
  0x1a   : > { %s529_s4 = smov 1024   ;;  %s530_s5 = smov 256  }
  0x1b   : > { %389 = sst [smem:[#allocation7]] (%p593_p4), %s529_s4  ;;  %s531_s12 = smov 2  }
  0x1c   : > { %390 = sst [smem:[#allocation7 + $0x1]] (%p593_p4), %s530_s5  ;;  %s532_s13 = smov 128  }
  0x1d   : > { %391 = sst [smem:[#allocation7 + $0x2]] (%p593_p4), %s531_s12  ;;  %s533_s23 = smov 8  }
  0x1e   : > { %392 = sst [smem:[#allocation7 + $0x3]] (%p593_p4), %s532_s13  ;;  %s104_s24 = scalar_lea.sflag [#allocation3], %s103_s22 }
  0x1f   : > { %s376_s15 = sshll.u32 %s118_s3, 26  ;;  %393 = sst [smem:[#allocation7 + $0x4]] (%p593_p4), %s532_s13 }
  0x20   : > { %s377_s17 = sadd.s32 134217728, %s376_s15  ;;  %394 = sst [smem:[#allocation7 + $0x5]] (%p593_p4), %s533_s23 }
  0x21   : > { %s534_s25 = smov [#allocation6]  }
  0x22   : > { %395 = dma.general (%p593_p4), %s127_s29, 512, %s129_s2, %s104_s24, %s534_s25, [#allocation7], %s377_s17, 0  }
  0x23 PF: > { %p378_p13 = scmp.ge.s32.totalorder %s527_s11, 1  ;;  %p149_p0 = scmp.lt.s32.totalorder %s527_s11, 5 }
  0x25   : > { %p150_p1 = pnand %p378_p13, %p149_p0 }
  0x26   : > { %s639_s26 = sand.u32 (!%p150_p1), 1, %s511_s7  }
  0x27   : > { %153 = sbr.rel (%p150_p1) target bundleno = 104 (0x68), region = 24  ;;  %s379_s27 = sshll.u32 (!%p150_p1), %s639_s26, 5 }
  0x28   : > { %s156_s28 = scalar_lea.sflag (!%p150_p1), [#allocation3], %s639_s26  ;;  %s159_s22 = scalar_lea.vmem (!%p150_p1), [#allocation2], %s379_s27 }
  0x2c   : > { %498 = dma.done.wait (%p599_p8), %s156_s28, 512  }
  0x2d   : > { %500 = vsyncadd (%p599_p8), %s156_s28, 4294966784  ;;  %vm183_vm0 = vcmask 130048   ;;  %v179_v0 = vld [vmem:[%s159_s22] sm:$0xff]  ;;  %v180_v1 = vld [vmem:[%s159_s22 + $0x8] sm:$0xff]  ;;  %s178_s16 = scalar_lea.vmem [#allocation5], %s379_s27  ;;  %s245_s18 = scalar_lea.sflag [#allocation4], %s639_s26 }
  0x2e   : > { %v181_v2 = vld [vmem:[%s159_s22 + $0x10] sm:$0xff]  ;;  %v182_v3 = vld [vmem:[%s159_s22 + $0x18] sm:$0xff]  ;;  %v184_v4 = vsel %vm183_vm0, %v179_v0, inf  ;;  %v187_v6 = vsel %vm183_vm0, %v180_v1, inf  ;;  %v199_v7 = vsel %vm183_vm0, %v179_v0, -inf  ;;  %v202_v11 = vsel %vm183_vm0, %v180_v1, -inf }
  0x2f   : > { %v185_v5 = vsel %vm183_vm0, %v181_v2, inf  ;;  %v188_v9 = vsel %vm183_vm0, %v182_v3, inf  ;;  %v200_v10 = vsel %vm183_vm0, %v181_v2, -inf  ;;  %v203_v14 = vsel %vm183_vm0, %v182_v3, -inf }
  0x30   : > { %v186_v8 = vmin.f32 %v184_v4, %v185_v5  ;;  %v189_v12 = vmin.f32 %v187_v6, %v188_v9  ;;  %v201_v13 = vmax.f32 %v199_v7, %v200_v10  ;;  %v204_v16 = vmax.f32 %v202_v11, %v203_v14 }
  0x32   : > { %v190_v15 = vsel %vm183_vm0, %v186_v8, inf  ;;  %v191_v17 = vsel %vm183_vm0, %v189_v12, inf  ;;  %v205_v18 = vsel %vm183_vm0, %v201_v13, -inf  ;;  %v206_v20 = vsel %vm183_vm0, %v204_v16, -inf }
  0x33   : > { %v192_v19 = vmin.f32 %v190_v15, %v191_v17  ;;  %v207_v21 = vmax.f32 %v205_v18, %v206_v20 }
  0x35   : > { %v193_v22 = vrot.slane %v192_v19, 4  ;;  %v208_v23 = vrot.slane %v207_v21, 4 }
  0x37   : > { %v194_v24 = vmin.f32 %v192_v19, %v193_v22  ;;  %v209_v25 = vmax.f32 %v207_v21, %v208_v23 }
  0x39   : > { %v195_v26 = vrot.slane %v194_v24, 2  ;;  %v210_v27 = vrot.slane %v209_v25, 2 }
  0x3b   : > { %v196_v28 = vmin.f32 %v194_v24, %v195_v26  ;;  %v211_v29 = vmax.f32 %v209_v25, %v210_v27 }
  0x3d   : > { %v197_v30 = vrot.slane %v196_v28, 1  ;;  %v212_v31 = vrot.slane %v211_v29, 1 }
  0x3f   : > { %v198_v32 = vmin.f32 %v196_v28, %v197_v30  ;;  %v213_v33 = vmax.f32 %v211_v29, %v212_v31 }
  0x41   : > { %v214_v34 = vsub.f32 %v213_v33, %v198_v32  ;;  %v230_v44 = vsub.f32 0.0, %v198_v32 }
  0x43   : > { %v215_v35 = vadd.f32 1e-08, %v214_v34 }
  0x45   : > { %471 = vrcp.f32 %v215_v35  ;;  %v227_v38 = vand.u32 2147483648, %v215_v35  ;;  %vm221_vm1 = vweird.f32 %v215_v35  ;;  %v225_v40 = vand.u32 2147483647, %v215_v35 }
  0x47   : > { %v228_v42 = vor.u32 1.1754944e-38, %v227_v38  ;;  %vm226_vm4 = vcmp.eq.f32.partialorder %v225_v40, 8.507059e+37 }
  0x4b   : > { %v472_v36 = vpop.eup %471 }
  0x4c   : > { %v217_v37 = vmul.f32 %v472_v36, %v215_v35  ;;  %vm222_vm2 = vweird.f32 %v472_v36 }
  0x4d   : > { %vm223_vm3 = vmor %vm221_vm1, %vm222_vm2 }
  0x4e   : > { %v218_v39 = vsub.f32 1.0, %v217_v37 }
  0x50   : > { %v219_v41 = vmul.f32 %v472_v36, %v218_v39 }
  0x52   : > { %v220_v43 = vadd.f32 %v472_v36, %v219_v41 }
  0x54   : > { %v224_v45 = vsel %vm223_vm3, %v472_v36, %v220_v43 }
  0x55   : > { %v229_v46 = vsel %vm226_vm4, %v228_v42, %v224_v45 }
  0x56   : > { %v231_v47 = vmul.f32 %v230_v44, %v229_v46  ;;  %v232_v48 = vmul.f32 %v229_v46, %v179_v0  ;;  %v233_v49 = vmul.f32 %v229_v46, %v180_v1  ;;  %v234_v50 = vmul.f32 %v229_v46, %v181_v2 }
  0x57   : > { %v235_v51 = vmul.f32 %v229_v46, %v182_v3 }
  0x58   : > { %v236_v52 = vadd.f32 %v232_v48, %v231_v47  ;;  %v237_v53 = vadd.f32 %v233_v49, %v231_v47  ;;  %v238_v54 = vadd.f32 %v234_v50, %v231_v47 }
  0x59   : > { %v239_v55 = vadd.f32 %v235_v51, %v231_v47 }
  0x5a   : > { %240 = vst.msk [vmem:[%s178_s16] sm:$0xff] %vm183_vm0, %v236_v52 }
  0x5b   : > { %241 = vst.msk [vmem:[%s178_s16 + $0x8] sm:$0xff] %vm183_vm0, %v237_v53 }
  0x5c   : > { %242 = vst.msk [vmem:[%s178_s16 + $0x10] sm:$0xff] %vm183_vm0, %v238_v54 }
  0x5d   : > { %243 = vst.msk [vmem:[%s178_s16 + $0x18] sm:$0xff] %vm183_vm0, %v239_v55 }
  0x5e   : > { %s387_s29 = sshll.u32 %s519_s9, 4  ;;  %s268_s30 = sshll.u32 %s178_s16, 4  ;;  %s269_s30 = int_to_ptr.vmem [resolvable:$true] %s268_s30 }
  0x5f   : > { %s257_s4 = scalar_lea.hbm %s709_s1, %s387_s29  ;;  %s535_s12 = smov 256  }
  0x60   : > { %s270_s5 = sshll.u32 %s257_s4, 4  ;;  %397 = sst [smem:[#allocation9]] (%p603_p9), %s535_s12  ;;  %s271_s5 = int_to_ptr.hbm [resolvable:$true] %s270_s5 }
  0x61   : > { %s536_s13 = smov 1024   ;;  %s537_s15 = smov 2  }
  0x62   : > { %398 = sst [smem:[#allocation9 + $0x1]] (%p603_p9), %s536_s13  ;;  %s538_s9 = smov 128  }
  0x63   : > { %399 = sst [smem:[#allocation9 + $0x2]] (%p603_p9), %s537_s15  ;;  %s539_s17 = smov 8  }
  0x64   : > { %400 = sst [smem:[#allocation9 + $0x3]] (%p603_p9), %s538_s9  ;;  %s540_s23 = smov [#allocation8]  }
  0x65   : > { %401 = sst [smem:[#allocation9 + $0x4]] (%p603_p9), %s538_s9  ;;  %s541_s24 = smov 0  }
  0x66   : > { %402 = sst [smem:[#allocation9 + $0x5]] (%p603_p9), %s539_s17 }
  0x67   : > { %403 = dma.general (%p603_p9), %s269_s30, 512, %s271_s5, %s245_s18, %s540_s23, [#allocation9], %s541_s24, 0  }
  0x68 PF: > { %p409_p2 = scmp.ge.s32.totalorder %s527_s11, 2  ;;  %s298_s25 = sand.u32 1, %s507_s6  }
  0x69   : > { %s299_s26 = scalar_lea.sflag [#allocation4], %s298_s25 }
  0x6a   : > { %p406_p3 = pnand %p409_p2, %p610_p11 }
  0x6c   : > { %p407_p4 = pneg %p406_p3 }
  0x6e   : > { %502 = dma.done.wait (%p407_p4), %s299_s26, 512  }
  0x6f   : > { %504 = vsyncadd (%p407_p4), %s299_s26, 4294966784  ;;  %s17_s11 = sadd.s32 1, %s527_s11   ;;  %s714_s6 = smov %s511_s7 }
  0x70   : > { %p14_p5 = scmp.ge.s32.totalorder %s17_s11, 6   ;;  %s715_s7 = smov %s515_s8 }
  0x71   : > { %s716_s8 = smov %s608_s20  ;;  %s717_s9 = smov %s523_s10 }
  0x72   : > { %s718_s10 = smov %s720_s14  ;;  %16 = sbr.rel (!%p14_p5) target bundleno = 6 (0x6), region = 79 }
  0x77   :  { %305 = vsyncpa [#allocation3], 1 }
  0x78   :  { %307 = vsyncpa [#allocation3 + $0x1], 1 }
  0x79   :  { %308 = vsyncpa [#allocation4], 1 }
  0x7a   :  { %310 = vsyncpa [#allocation4 + $0x1], 1 }

</bundles_post_ra>
